<compile_context>
chip_gen: v6e
topology: v6e:2x2x1
jax: 0.10.0
libtpu: 0.0.40
codegen_flags: <defaults>
</compile_context>

<pallas_src>
import jax
import jax.numpy as jnp
from jax.experimental import pallas as pl
from jax.experimental.pallas import tpu as pltpu

_TB_TARGET = 1024  # batch-tile rows (sweepable 512-2048; fits VMEM on v5e/v6e/v7x)


def _round_up(n, m):
    return (n + m - 1) // m * m


def mlp_kernel(x_ref, w1_ref, w2_ref, w3_ref, w4_ref, w5_ref, b_ref, o_ref):
    """One batch tile: 4 MXU matmuls (bf16 in / f32 acc) + f32 matvec + sigmoid."""
    dt = w1_ref.dtype                      # bf16 MXU input dtype
    b = b_ref[...]                         # (5, Fpad) f32 stacked biases

    x = x_ref[...].astype(dt)              # (TB, d_in) f32 -> bf16 in-kernel (cheap VPU pack)
    h = jnp.dot(x, w1_ref[...], preferred_element_type=jnp.float32) + b[0:1, :]
    h = jnp.dot(h.astype(dt), w2_ref[...], preferred_element_type=jnp.float32) + b[1:2, :]
    h = jnp.dot(h.astype(dt), w3_ref[...], preferred_element_type=jnp.float32) + b[2:3, :]
    h = jnp.dot(h.astype(dt), w4_ref[...], preferred_element_type=jnp.float32) + b[3:4, :]

    # Final (hidden -> 1) layer: exact f32 VPU multiply + XLU lane-reduce against a
    # broadcast weight row.  Avoids a padded 128-lane MXU column and keeps the
    # output writeback at 4 bytes per batch row.
    z = jnp.sum(h * w5_ref[...], axis=-1, keepdims=True) + b[4:5, 0:1]

    # Sigmoid epilogue (exp -> EUP; hidden under DMA/MXU, exact reciprocal is fine).
    o_ref[...] = (1.0 / (1.0 + jnp.exp(-z))).astype(o_ref.dtype)


def prepare_params(params, compute_dtype=jnp.bfloat16):
    """One-time (per model) weight prep: pad hidden dims to a common multiple of 128
    lanes, cast matmul weights to bf16, keep biases + final weight row in f32.

    params: list of 5 (W, b) with W = (fan_in, fan_out), b = (1, fan_out).
    """
    ws = [w for w, _ in params]
    bs = [b for _, b in params]
    assert len(ws) == 5 and ws[4].shape[1] == 1, "expected 5 layers ending in width 1"

    d_in = ws[0].shape[0]
    hidden_dims = [w.shape[1] for w in ws[:4]]
    f_pad = _round_up(max(hidden_dims), 128)   # common lane pad for all hidden layers

    def pad_to(w, rows, cols, dtype):
        return jnp.zeros((rows, cols), dtype).at[:w.shape[0], :w.shape[1]].set(
            w.astype(dtype))

    w1p = pad_to(ws[0], d_in, f_pad, compute_dtype)   # (d_in, Fpad): K left unpadded
    w2p = pad_to(ws[1], f_pad, f_pad, compute_dtype)
    w3p = pad_to(ws[2], f_pad, f_pad, compute_dtype)
    w4p = pad_to(ws[3], f_pad, f_pad, compute_dtype)

    # Final layer weight as a zero-padded f32 broadcast row (1, Fpad).
    w5row = jnp.zeros((1, f_pad), jnp.float32).at[0, :ws[4].shape[0]].set(
        ws[4][:, 0].astype(jnp.float32))

    # Stacked f32 biases: rows 0..3 = layers 1..4 (zero-padded), row 4 col 0 = final bias.
    bstack = jnp.zeros((5, f_pad), jnp.float32)
    for i in range(4):
        bstack = bstack.at[i, :bs[i].shape[1]].set(bs[i][0].astype(jnp.float32))
    bstack = bstack.at[4, 0].set(bs[4][0, 0].astype(jnp.float32))

    return (w1p, w2p, w3p, w4p, w5row, bstack)


@jax.jit
def mlp_forward(x, prepared):
    """x: (B, inputSize) f32; prepared: output of prepare_params()."""
    w1p, w2p, w3p, w4p, w5row, bstack = prepared
    B, d_in = x.shape
    assert w1p.shape[0] == d_in, "input feature dim mismatch with prepared params"

    # Batch tiling: big tiles to amortize the ~0.35us/grid-step overhead; shrink
    # for tiny batches so no useless rows are computed.
    tb = _TB_TARGET if B >= _TB_TARGET else _round_up(B, 8)
    b_pad = _round_up(B, tb)
    xp = x if b_pad == B else jnp.pad(x, ((0, b_pad - B), (0, 0)))

    grid = (b_pad // tb,)
    in_specs = [pl.BlockSpec((tb, d_in), lambda i: (i, 0))]   # x: unpadded feature dim
    for a in (w1p, w2p, w3p, w4p, w5row, bstack):
        # constant index_map -> block stays VMEM-resident across all grid steps
        in_specs.append(pl.BlockSpec(a.shape, lambda i: (0, 0)))

    out = pl.pallas_call(
        mlp_kernel,
        grid=grid,
        in_specs=in_specs,
        out_specs=pl.BlockSpec((tb, 1), lambda i: (i, 0)),     # 4 B/row writeback
        out_shape=jax.ShapeDtypeStruct((b_pad, 1), jnp.float32),
        compiler_params=pltpu.CompilerParams(
            dimension_semantics=("parallel",),                 # megacore-shard batch tiles
            vmem_limit_bytes=32 * 1024 * 1024),
    )(xp, w1p, w2p, w3p, w4p, w5row, bstack)

    return out if b_pad == B else out[:B]


def init_params(key, input_size, hidden_size):
    """Deterministic init mimicking nn.Linear default (uniform(+-1/sqrt(fan_in)))."""
    dims = [
        (input_size, hidden_size),             # l1
        (hidden_size, hidden_size + 10),       # hidden
        (hidden_size + 10, hidden_size + 10),  # hidden2
        (hidden_size + 10, hidden_size),       # hidden3
        (hidden_size, 1),                      # l2
    ]
    params = []
    for (fan_in, fan_out) in dims:
        key, kw, kb = jax.random.split(key, 3)
        bound = 1.0 / jnp.sqrt(jnp.float32(fan_in))
        w = jax.random.uniform(kw, (fan_in, fan_out), jnp.float32, -bound, bound)
        b = jax.random.uniform(kb, (1, fan_out), jnp.float32, -bound, bound)
        params.append((w, b))
    return params


def reference_forward(x, params):
    h = x
    for w, b in params:
        h = h @ w + b
    return jax.nn.sigmoid(h)


if __name__ == "__main__":
    # NOTE: the PyTorch module accepts a `dropout` arg but never uses it in forward,
    # so there is nothing to translate for it.
    input_size = 16
    hidden_size = 32
    batch = 8

    key = jax.random.PRNGKey(0)
    key, kx = jax.random.split(key)
    x = jax.random.normal(kx, (batch, input_size), jnp.float32)

    params = init_params(key, input_size, hidden_size)
    prepared = prepare_params(params)        # one-time weight pad/cast (hoisted out of forward)

    out = mlp_forward(x, prepared)
    out = jax.block_until_ready(out)

    ref = reference_forward(x, params)
    assert out.shape == (batch, 1), out.shape

    # bf16 MXU inputs give ~1e-2-level logit deviation; sigmoid compresses it further.
    assert jnp.allclose(out, ref, atol=5e-2, rtol=5e-2), "mismatch vs reference"

    print("KERNEL_OK")
</pallas_src>

<mosaic_0001>
module attributes {stable_mosaic.version = 11 : i64} {
  func.func @mlp_kernel(%arg0: i32, %arg1: memref<8x16xf32, #tpu.memory_space<vmem>>, %arg2: memref<16x128xbf16, #tpu.memory_space<vmem>>, %arg3: memref<128x128xbf16, #tpu.memory_space<vmem>>, %arg4: memref<128x128xbf16, #tpu.memory_space<vmem>>, %arg5: memref<128x128xbf16, #tpu.memory_space<vmem>>, %arg6: memref<1x128xf32, #tpu.memory_space<vmem>>, %arg7: memref<5x128xf32, #tpu.memory_space<vmem>>, %arg8: memref<8x1xf32, #tpu.memory_space<vmem>>) attributes {dimension_semantics = [#tpu.dimension_semantics<parallel>], iteration_bounds = array<i64: 1>, scalar_prefetch = 0 : i64, scratch_operands = 0 : i64, tpu.core_type = #tpu.core_type<tc>, window_params = [{transform_indices = @transform_0, window_bounds = array<i64: 8, 16>}, {pipeline_mode = #tpu.pipeline_mode<synchronous>, transform_indices = @transform_1, window_bounds = array<i64: 16, 128>}, {pipeline_mode = #tpu.pipeline_mode<synchronous>, transform_indices = @transform_2, window_bounds = array<i64: 128, 128>}, {pipeline_mode = #tpu.pipeline_mode<synchronous>, transform_indices = @transform_3, window_bounds = array<i64: 128, 128>}, {pipeline_mode = #tpu.pipeline_mode<synchronous>, transform_indices = @transform_4, window_bounds = array<i64: 128, 128>}, {pipeline_mode = #tpu.pipeline_mode<synchronous>, transform_indices = @transform_5, window_bounds = array<i64: 1, 128>}, {pipeline_mode = #tpu.pipeline_mode<synchronous>, transform_indices = @transform_6, window_bounds = array<i64: 5, 128>}, {transform_indices = @transform_7, window_bounds = array<i64: 8, 1>}]} {
    %c0 = arith.constant 0 : index
    %c0_0 = arith.constant 0 : index
    %0 = vector.load %arg7[%c0, %c0_0] : memref<5x128xf32, #tpu.memory_space<vmem>>, vector<5x128xf32>
    %c0_1 = arith.constant 0 : index
    %c0_2 = arith.constant 0 : index
    %1 = vector.load %arg1[%c0_1, %c0_2] : memref<8x16xf32, #tpu.memory_space<vmem>>, vector<8x16xf32>
    %2 = arith.truncf %1 : vector<8x16xf32> to vector<8x16xbf16>
    %c0_3 = arith.constant 0 : index
    %c0_4 = arith.constant 0 : index
    %3 = vector.load %arg2[%c0_3, %c0_4] : memref<16x128xbf16, #tpu.memory_space<vmem>>, vector<16x128xbf16>
    %cst = arith.constant dense<0.000000e+00> : vector<8x128xf32>
    %4 = tpu.matmul %2, %3, %cst {dimension_numbers = #tpu.dot_dimension_numbers<[1], [0], [0], [1], [0, 0, 1, 1], [], []>} : vector<8x16xbf16>, vector<16x128xbf16>, vector<8x128xf32> -> vector<8x128xf32>
    %5 = vector.extract_strided_slice %0 {offsets = [0, 0], sizes = [1, 128], strides = [1, 1]} : vector<5x128xf32> to vector<1x128xf32>
    %6 = vector.broadcast %5 : vector<1x128xf32> to vector<8x128xf32>
    %7 = arith.addf %4, %6 : vector<8x128xf32>
    %8 = arith.truncf %7 : vector<8x128xf32> to vector<8x128xbf16>
    %c0_5 = arith.constant 0 : index
    %c0_6 = arith.constant 0 : index
    %9 = vector.load %arg3[%c0_5, %c0_6] : memref<128x128xbf16, #tpu.memory_space<vmem>>, vector<128x128xbf16>
    %cst_7 = arith.constant dense<0.000000e+00> : vector<8x128xf32>
    %10 = tpu.matmul %8, %9, %cst_7 {dimension_numbers = #tpu.dot_dimension_numbers<[1], [0], [0], [1], [0, 0, 1, 1], [], []>} : vector<8x128xbf16>, vector<128x128xbf16>, vector<8x128xf32> -> vector<8x128xf32>
    %11 = vector.extract_strided_slice %0 {offsets = [1, 0], sizes = [1, 128], strides = [1, 1]} : vector<5x128xf32> to vector<1x128xf32>
    %12 = vector.broadcast %11 : vector<1x128xf32> to vector<8x128xf32>
    %13 = arith.addf %10, %12 : vector<8x128xf32>
    %14 = arith.truncf %13 : vector<8x128xf32> to vector<8x128xbf16>
    %c0_8 = arith.constant 0 : index
    %c0_9 = arith.constant 0 : index
    %15 = vector.load %arg4[%c0_8, %c0_9] : memref<128x128xbf16, #tpu.memory_space<vmem>>, vector<128x128xbf16>
    %cst_10 = arith.constant dense<0.000000e+00> : vector<8x128xf32>
    %16 = tpu.matmul %14, %15, %cst_10 {dimension_numbers = #tpu.dot_dimension_numbers<[1], [0], [0], [1], [0, 0, 1, 1], [], []>} : vector<8x128xbf16>, vector<128x128xbf16>, vector<8x128xf32> -> vector<8x128xf32>
    %17 = vector.extract_strided_slice %0 {offsets = [2, 0], sizes = [1, 128], strides = [1, 1]} : vector<5x128xf32> to vector<1x128xf32>
    %18 = vector.broadcast %17 : vector<1x128xf32> to vector<8x128xf32>
    %19 = arith.addf %16, %18 : vector<8x128xf32>
    %20 = arith.truncf %19 : vector<8x128xf32> to vector<8x128xbf16>
    %c0_11 = arith.constant 0 : index
    %c0_12 = arith.constant 0 : index
    %21 = vector.load %arg5[%c0_11, %c0_12] : memref<128x128xbf16, #tpu.memory_space<vmem>>, vector<128x128xbf16>
    %cst_13 = arith.constant dense<0.000000e+00> : vector<8x128xf32>
    %22 = tpu.matmul %20, %21, %cst_13 {dimension_numbers = #tpu.dot_dimension_numbers<[1], [0], [0], [1], [0, 0, 1, 1], [], []>} : vector<8x128xbf16>, vector<128x128xbf16>, vector<8x128xf32> -> vector<8x128xf32>
    %23 = vector.extract_strided_slice %0 {offsets = [3, 0], sizes = [1, 128], strides = [1, 1]} : vector<5x128xf32> to vector<1x128xf32>
    %24 = vector.broadcast %23 : vector<1x128xf32> to vector<8x128xf32>
    %25 = arith.addf %22, %24 : vector<8x128xf32>
    %c0_14 = arith.constant 0 : index
    %c0_15 = arith.constant 0 : index
    %26 = vector.load %arg6[%c0_14, %c0_15] : memref<1x128xf32, #tpu.memory_space<vmem>>, vector<1x128xf32>
    %27 = vector.broadcast %26 : vector<1x128xf32> to vector<8x128xf32>
    %28 = arith.mulf %25, %27 : vector<8x128xf32>
    %cst_16 = arith.constant dense<0.000000e+00> : vector<8xf32>
    %29 = vector.multi_reduction <add>, %28, %cst_16 [1] : vector<8x128xf32> to vector<8xf32>
    %30 = vector.shape_cast %29 : vector<8xf32> to vector<8x1xf32>
    %31 = vector.extract_strided_slice %0 {offsets = [4, 0], sizes = [1, 1], strides = [1, 1]} : vector<5x128xf32> to vector<1x1xf32>
    %32 = vector.broadcast %31 : vector<1x1xf32> to vector<8x1xf32>
    %33 = arith.addf %30, %32 : vector<8x1xf32>
    %cst_17 = arith.constant 0.000000e+00 : f32
    %34 = vector.broadcast %cst_17 : f32 to vector<8x1xf32>
    %35 = arith.subf %34, %33 : vector<8x1xf32>
    %36 = math.exp %35 : vector<8x1xf32>
    %cst_18 = arith.constant 1.000000e+00 : f32
    %37 = vector.broadcast %cst_18 : f32 to vector<8x1xf32>
    %38 = arith.addf %37, %36 : vector<8x1xf32>
    %cst_19 = arith.constant 1.000000e+00 : f32
    %39 = vector.broadcast %cst_19 : f32 to vector<8x1xf32>
    %40 = arith.divf %39, %38 : vector<8x1xf32>
    %c0_20 = arith.constant 0 : index
    %c0_21 = arith.constant 0 : index
    %41 = vector.load %arg8[%c0_20, %c0_21] : memref<8x1xf32, #tpu.memory_space<vmem>>, vector<8x1xf32>
    tpu.vector_store %arg8[%c0_20, %c0_21], %40 {strides = array<i32>} : memref<8x1xf32, #tpu.memory_space<vmem>>, vector<8x1xf32>,
    return
  }
  func.func @transform_0(%arg0: i32) -> (i32, i32) {
    %c0_i32 = arith.constant 0 : i32
    %c0_i32_0 = arith.constant 0 : i32
    return %arg0, %c0_i32 : i32, i32
  }
  func.func @transform_1(%arg0: i32) -> (i32, i32) {
    %c0_i32 = arith.constant 0 : i32
    %c0_i32_0 = arith.constant 0 : i32
    %c0_i32_1 = arith.constant 0 : i32
    return %c0_i32, %c0_i32_0 : i32, i32
  }
  func.func @transform_2(%arg0: i32) -> (i32, i32) {
    %c0_i32 = arith.constant 0 : i32
    %c0_i32_0 = arith.constant 0 : i32
    %c0_i32_1 = arith.constant 0 : i32
    return %c0_i32, %c0_i32_0 : i32, i32
  }
  func.func @transform_3(%arg0: i32) -> (i32, i32) {
    %c0_i32 = arith.constant 0 : i32
    %c0_i32_0 = arith.constant 0 : i32
    %c0_i32_1 = arith.constant 0 : i32
    return %c0_i32, %c0_i32_0 : i32, i32
  }
  func.func @transform_4(%arg0: i32) -> (i32, i32) {
    %c0_i32 = arith.constant 0 : i32
    %c0_i32_0 = arith.constant 0 : i32
    %c0_i32_1 = arith.constant 0 : i32
    return %c0_i32, %c0_i32_0 : i32, i32
  }
  func.func @transform_5(%arg0: i32) -> (i32, i32) {
    %c0_i32 = arith.constant 0 : i32
    %c0_i32_0 = arith.constant 0 : i32
    %c0_i32_1 = arith.constant 0 : i32
    return %c0_i32, %c0_i32_0 : i32, i32
  }
  func.func @transform_6(%arg0: i32) -> (i32, i32) {
    %c0_i32 = arith.constant 0 : i32
    %c0_i32_0 = arith.constant 0 : i32
    %c0_i32_1 = arith.constant 0 : i32
    return %c0_i32, %c0_i32_0 : i32, i32
  }
  func.func @transform_7(%arg0: i32) -> (i32, i32) {
    %c0_i32 = arith.constant 0 : i32
    %c0_i32_0 = arith.constant 0 : i32
    return %arg0, %c0_i32 : i32, i32
  }
}

</mosaic_0001>

<bundles_post_ra>
// kernel: mlp_forward.1
= control target key start
LH: loop header
LB: loop body
LE: loop exit
PB: predicated region body
PF: predicated region fallthrough
CT: control target
= control target key end

     0   :  { %12 = vsyncpa [#allocation3], 0  ;;  %s907_s0 = inlined_call_operand.hbm [shape: f32[8,16], index: 0, kind: input, shape index: {}]   ;;  %s908_s1 = inlined_call_operand.hbm [shape: bf16[16,128], index: 1, kind: input, shape index: {}]   ;;  %s909_s2 = inlined_call_operand.hbm [shape: bf16[128,128], index: 2, kind: input, shape index: {}]   ;;  %s910_s3 = inlined_call_operand.hbm [shape: bf16[128,128], index: 3, kind: input, shape index: {}]   ;;  %s911_s4 = inlined_call_operand.hbm [shape: bf16[128,128], index: 4, kind: input, shape index: {}]   ;;  %s912_s5 = inlined_call_operand.vmem [shape: f32[1,128], index: 5, kind: input, shape index: {}]   ;;  %s913_s6 = inlined_call_operand.vmem [shape: f32[5,128], index: 6, kind: input, shape index: {}]   ;;  %s914_s7 = inlined_call_operand.vmem [shape: f32[8,1], index: 7, kind: output, shape index: {}]  }
   0x1   :  { %13 = vsyncpa [#allocation5], 0 }
   0x2   :  { %14 = vsyncpa [#allocation8], 0  ;;  %s775_s24 = smov [#allocation4]  }
   0x3   :  { %s30_s25 = sshll.u32 %s775_s24, 4  ;;  %s31_s25 = int_to_ptr.vmem [resolvable:$true] %s30_s25 }
   0x4   :  { %s677_s26 = scalar_lea.vmem %s31_s25, 128  ;;  %p682_p1 = scmp.lt.s32.totalorder %s31_s25, %s31_s25 }
   0x5   :  { %p678_p0 = scmp.ne.s32.totalorder %s31_s25, %s677_s26  ;;  %p683_p2 = scmp.lt.s32.totalorder %s677_s26, %s677_s26 }
   0x7   :  { %p684_p3 = por %p683_p2, %p682_p1 }
   0x9   :  { %p685_p4 = pnand %p684_p3, %p678_p0 }
   0xb   :  { %688 = shalt.err (!%p685_p4)
}
   0xc   :  { %s776_s27 = smov 64   ;;  %s777_s28 = smov 4  }
   0xd   :  { %36 = dma.hbm_to_vmem [thread:$0]  %s908_s1, 128, %s31_s25, [#allocation5], %s776_s27, %s776_s27, %s777_s28  }
   0xe   :  { %s778_s8 = smov [#allocation7]   ;;  %s779_s10 = smov [#allocation2]  }
   0xf   :  { %s54_s9 = sshll.u32 %s778_s8, 4  ;;  %s21_s11 = sshll.u32 %s779_s10, 4  ;;  %s55_s9 = int_to_ptr.vmem [resolvable:$true] %s54_s9  ;;  %s22_s11 = int_to_ptr.vmem [resolvable:$true] %s21_s11 }
  0x10   :  { %s697_s12 = scalar_lea.vmem %s55_s9, 1024  ;;  %p702_p6 = scmp.lt.s32.totalorder %s55_s9, %s55_s9 }
  0x11   :  { %p698_p5 = scmp.ne.s32.totalorder %s55_s9, %s697_s12  ;;  %p703_p7 = scmp.lt.s32.totalorder %s697_s12, %s697_s12 }
  0x13   :  { %p704_p8 = por %p703_p7, %p702_p6 }
  0x15   :  { %p705_p9 = pnand %p704_p8, %p698_p5 }
  0x17   :  { %708 = shalt.err (!%p705_p9)
}
  0x18   :  { %60 = dma.hbm_to_vmem [thread:$0]  %s910_s3, 1024, %s55_s9, [#allocation8], %s776_s27, %s776_s27, %s777_s28  }
  0x19   :  { %s717_s1 = scalar_lea.vmem %s22_s11, 128  ;;  %p722_p11 = scmp.lt.s32.totalorder %s22_s11, %s22_s11 }
  0x1a   :  { %p718_p10 = scmp.ne.s32.totalorder %s22_s11, %s717_s1  ;;  %p723_p12 = scmp.lt.s32.totalorder %s717_s1, %s717_s1 }
  0x1c   :  { %p724_p13 = por %p723_p12, %p722_p11 }
  0x1e   :  { %p725_p0 = pnand %p724_p13, %p718_p10 }
  0x20   :  { %728 = shalt.err (!%p725_p0)
}
  0x21   :  { %24 = dma.hbm_to_vmem [thread:$0]  %s907_s0, 128, %s22_s11, [#allocation3]  }
  0x22   :  { %s780_s17 = smov [#allocation6]   ;;  %s781_s19 = smov [#allocation9]  }
  0x23   :  { %s42_s18 = sshll.u32 %s780_s17, 4  ;;  %s66_s20 = sshll.u32 %s781_s19, 4  ;;  %s43_s18 = int_to_ptr.vmem [resolvable:$true] %s42_s18  ;;  %s67_s20 = int_to_ptr.vmem [resolvable:$true] %s66_s20 }
  0x24   :  { %s737_s21 = scalar_lea.vmem %s43_s18, 1024  ;;  %p742_p2 = scmp.lt.s32.totalorder %s43_s18, %s43_s18 }
  0x25   :  { %p738_p1 = scmp.ne.s32.totalorder %s43_s18, %s737_s21  ;;  %p743_p3 = scmp.lt.s32.totalorder %s737_s21, %s737_s21 }
  0x27   :  { %p744_p4 = por %p743_p3, %p742_p2 }
  0x29   :  { %p745_p5 = pnand %p744_p4, %p738_p1 }
  0x2b   :  { %748 = shalt.err (!%p745_p5)
}
  0x2c   :  { %48 = dma.hbm_to_vmem [thread:$0]  %s909_s2, 1024, %s43_s18, [#allocation5], %s776_s27, %s776_s27, %s777_s28  }
  0x2d   :  { %s757_s0 = scalar_lea.vmem %s67_s20, 1024  ;;  %p762_p7 = scmp.lt.s32.totalorder %s67_s20, %s67_s20 }
  0x2e   :  { %p758_p6 = scmp.ne.s32.totalorder %s67_s20, %s757_s0  ;;  %p763_p8 = scmp.lt.s32.totalorder %s757_s0, %s757_s0 }
  0x30   :  { %p764_p9 = por %p763_p8, %p762_p7 }
  0x32   :  { %p765_p10 = pnand %p764_p9, %p758_p6 }
  0x34   :  { %768 = shalt.err (!%p765_p10)
}
  0x35   :  { %72 = dma.hbm_to_vmem [thread:$0]  %s911_s4, 1024, %s67_s20, [#allocation8], %s776_s27, %s776_s27, %s777_s28  }
  0x36   :  { %769 = dma.done.wait [#allocation3], 128  }
  0x37   :  { %770 = vsyncadd [#allocation3], 4294967168 }
  0x38   :  { %771 = dma.done.wait [#allocation5], 1152  }
  0x39   :  { %772 = vsyncadd [#allocation5], 4294966144 }
  0x3a   :  { %773 = dma.done.wait [#allocation8], 2048  }
  0x3b   :  { %774 = vsyncadd [#allocation8], 4294965248  ;;  %v782_v0 = vmov 0.0   ;;  %vm783_vm0 = vmmov 0   ;;  %v640_v1 = vld [vmem:[#allocation4] sm:$0xff]   ;;  %v94_v2 = vld [vmem:[#allocation2] sm:$0xff]  ;;  %v98_v19 = vlaneseq }
  0x3c   :  { %565 = vmatprep.subr.bf16.mxu0 %v782_v0  ;;  %567 = vmatprep.mubr.msk.bf16.mxu0 %vm783_vm0, %v782_v0  ;;  %v95_v3 = vpack.c.bf16 %v94_v2, %v94_v2  ;;  %vm108_vm1 = vcmask 130048   ;;  %v641_v4 = vld [vmem:[#allocation6 + $0x38] sm:$0xff]   ;;  %v642_v5 = vld [vmem:[#allocation6 + $0x30] sm:$0xff]   ;;  %v643_v6 = vld [vmem:[#allocation6 + $0x28] sm:$0xff]   ;;  %vm500_vm2 = vcmask 7168  }
  0x3d   :  { %571 = vmatprep.subr.bf16.mxu1 %v782_v0  ;;  %587 = vmatprep.mubr.msk.bf16.mxu1 %vm783_vm0, %v782_v0  ;;  %v644_v7 = vld [vmem:[#allocation6 + $0x20] sm:$0xff]   ;;  %v645_v8 = vld [vmem:[#allocation6 + $0x18] sm:$0xff]   ;;  %v646_v9 = vld [vmem:[#allocation6 + $0x10] sm:$0xff]   ;;  %v875_v20 = vshrl.u32 %v98_v19, 7 }
  0x3e   :  { %566 = vmatpush3.bf16.msra.mxu0 %v640_v1  ;;  %572 = vmatpush3.bf16.msra.mxu1 %v641_v4  ;;  %v647_v10 = vld [vmem:[#allocation6 + $0x8] sm:$0xff]   ;;  %v648_v11 = vld [vmem:[#allocation6] sm:$0xff]   ;;  %v649_v12 = vld [vmem:[#allocation7 + $0x38] sm:$0xff]  }
  0x3f   :  { %591 = vmatprep.subr.bf16.mxu0 %v782_v0  ;;  %573 = vmatprep.subr.bf16.mxu1 %v782_v0  ;;  %v650_v13 = vld [vmem:[#allocation7 + $0x30] sm:$0xff]   ;;  %v651_v14 = vld [vmem:[#allocation7 + $0x28] sm:$0xff]   ;;  %v652_v15 = vld [vmem:[#allocation7 + $0x20] sm:$0xff]   ;;  %v100_v21 = vsub.s32 0, %v875_v20  ;;  %v171_v38 = vsub.s32 1, %v875_v20  ;;  %v280_v47 = vsub.s32 2, %v875_v20 }
  0x40   :  { %v653_v16 = vld [vmem:[#allocation7 + $0x18] sm:$0xff]   ;;  %v654_v17 = vld [vmem:[#allocation7 + $0x10] sm:$0xff]   ;;  %v655_v18 = vld [vmem:[#allocation7 + $0x8] sm:$0xff]   ;;  %v389_v55 = vsub.s32 3, %v875_v20 }
  0x41   :  { %568 = vmatmul.mubr.msk.bf16.vlgmr.msra.gmra.mxu0 %vm108_vm1, %v95_v3  ;;  %v881_v22 = vld [vmem:[%s913_s6] sm:$0x1f]  ;;  %v656_v30 = vld [vmem:[#allocation7] sm:$0xff]   ;;  %v657_v31 = vld [vmem:[#allocation9 + $0x38] sm:$0xff]  }
  0x42   :  { %607 = vmatprep.mubr.msk.bf16.mxu0 %vm783_vm0, %v782_v0  ;;  %574 = vmatpush3.bf16.msra.mxu1 %v642_v5  ;;  %v101_v23 = vrot.slane %v881_v22, %v100_v21  ;;  %v658_v32 = vld [vmem:[#allocation9 + $0x30] sm:$0xff]   ;;  %v659_v33 = vld [vmem:[#allocation9 + $0x28] sm:$0xff]   ;;  %v660_v34 = vld [vmem:[#allocation9 + $0x20] sm:$0xff]   ;;  %v172_v39 = vrot.slane %v881_v22, %v171_v38  ;;  %v281_v48 = vrot.slane %v881_v22, %v280_v47 }
  0x43   :  { %575 = vmatprep.subr.bf16.mxu1 %v782_v0  ;;  %592 = vmatpush3.bf16.msra.mxu0 %v649_v12  ;;  %v661_v35 = vld [vmem:[#allocation9 + $0x18] sm:$0xff]   ;;  %v662_v36 = vld [vmem:[#allocation9 + $0x10] sm:$0xff]   ;;  %v663_v37 = vld [vmem:[#allocation9 + $0x8] sm:$0xff]   ;;  %v390_v56 = vrot.slane %v881_v22, %v389_v55 }
  0x44   :  { %593 = vmatprep.subr.bf16.mxu0 %v782_v0  ;;  %v664_v46 = vld [vmem:[#allocation9] sm:$0xff]   ;;  %v535_v58 = vld [vmem:[%s912_s5] ss:$0 sm:$0xff] }
  0x46   :  { %576 = vmatpush3.bf16.msra.mxu1 %v643_v6 }
  0x47   :  { %577 = vmatprep.subr.bf16.mxu1 %v782_v0  ;;  %594 = vmatpush3.bf16.msra.mxu0 %v650_v13 }
  0x48   :  { %595 = vmatprep.subr.bf16.mxu0 %v782_v0 }
  0x4a   :  { %578 = vmatpush3.bf16.msra.mxu1 %v644_v7 }
  0x4b   :  { %579 = vmatprep.subr.bf16.mxu1 %v782_v0  ;;  %596 = vmatpush3.bf16.msra.mxu0 %v651_v14 }
  0x4c   :  { %597 = vmatprep.subr.bf16.mxu0 %v782_v0 }
  0x4e   :  { %580 = vmatpush3.bf16.msra.mxu1 %v645_v8 }
  0x4f   :  { %581 = vmatprep.subr.bf16.mxu1 %v782_v0  ;;  %598 = vmatpush3.bf16.msra.mxu0 %v652_v15 }
  0x50   :  { %599 = vmatprep.subr.bf16.mxu0 %v782_v0 }
  0x52   :  { %582 = vmatpush3.bf16.msra.mxu1 %v646_v9 }
  0x53   :  { %583 = vmatprep.subr.bf16.mxu1 %v782_v0  ;;  %600 = vmatpush3.bf16.msra.mxu0 %v653_v16 }
  0x54   :  { %601 = vmatprep.subr.bf16.mxu0 %v782_v0 }
  0x56   :  { %584 = vmatpush3.bf16.msra.mxu1 %v647_v10 }
  0x57   :  { %585 = vmatprep.subr.bf16.mxu1 %v782_v0  ;;  %602 = vmatpush3.bf16.msra.mxu0 %v654_v17 }
  0x58   :  { %603 = vmatprep.subr.bf16.mxu0 %v782_v0 }
  0x5a   :  { %586 = vmatpush3.bf16.msra.mxu1 %v648_v11 }
  0x5b   :  { %611 = vmatprep.subr.bf16.mxu1 %v782_v0  ;;  %604 = vmatpush3.bf16.msra.mxu0 %v655_v18 }
  0x5c   :  { %605 = vmatprep.subr.bf16.mxu0 %v782_v0 }
  0x5f   :  { %606 = vmatpush3.bf16.msra.mxu0 %v656_v30 }
 0x101   :  { %v146_v24 = vpop.f32.mrf.mxu0 }
 0x102   :  { %v147_v25 = vadd.f32 %v146_v24, %v101_v23 }
 0x103   :  { %v569_v26 = vpop.f32.mrf.mxu0 }
 0x104   :  { %v152_v27 = vpack.c.bf16 %v147_v25, %v147_v25 }
 0x105   :  { %v149_v28 = vpop.f32.mrf.mxu0 }
 0x106   :  { %588 = vmatmul.mubr.bf16.vlgmr.msra.gmra.mxu1 %v152_v27 }
 0x107   :  { %v570_v29 = vpop.f32.mrf.mxu0  ;;  %627 = vmatprep.mubr.msk.bf16.mxu1 %vm783_vm0, %v782_v0  ;;  %612 = vmatpush3.bf16.msra.mxu1 %v657_v31 }
 0x108   :  { %613 = vmatprep.subr.bf16.mxu1 %v782_v0 }
 0x10b   :  { %614 = vmatpush3.bf16.msra.mxu1 %v658_v32 }
 0x10c   :  { %615 = vmatprep.subr.bf16.mxu1 %v782_v0 }
 0x10f   :  { %616 = vmatpush3.bf16.msra.mxu1 %v659_v33 }
 0x110   :  { %617 = vmatprep.subr.bf16.mxu1 %v782_v0 }
 0x113   :  { %618 = vmatpush3.bf16.msra.mxu1 %v660_v34 }
 0x114   :  { %619 = vmatprep.subr.bf16.mxu1 %v782_v0 }
 0x117   :  { %620 = vmatpush3.bf16.msra.mxu1 %v661_v35 }
 0x118   :  { %621 = vmatprep.subr.bf16.mxu1 %v782_v0 }
 0x11b   :  { %622 = vmatpush3.bf16.msra.mxu1 %v662_v36 }
 0x11c   :  { %623 = vmatprep.subr.bf16.mxu1 %v782_v0 }
 0x11f   :  { %624 = vmatpush3.bf16.msra.mxu1 %v663_v37 }
 0x120   :  { %625 = vmatprep.subr.bf16.mxu1 %v782_v0  ;;  %v491_v0 = vsub.s32 4, %v875_v20 }
 0x122   :  { %v492_v1 = vrot.slane %v881_v22, %v491_v0 }
 0x123   :  { %626 = vmatpush3.bf16.msra.mxu1 %v664_v46 }
 0x1c6   :  { %v255_v40 = vpop.f32.mrf.mxu1 }
 0x1c7   :  { %v256_v41 = vadd.f32 %v255_v40, %v172_v39 }
 0x1c8   :  { %v589_v42 = vpop.f32.mrf.mxu1 }
 0x1c9   :  { %v261_v43 = vpack.c.bf16 %v256_v41, %v256_v41 }
 0x1ca   :  { %v258_v44 = vpop.f32.mrf.mxu1 }
 0x1cb   :  { %608 = vmatmul.mubr.bf16.vlgmr.msra.gmra.mxu0 %v261_v43 }
 0x1cc   :  { %v590_v45 = vpop.f32.mrf.mxu1 }
 0x28b   :  { %v364_v49 = vpop.f32.mrf.mxu0 }
 0x28c   :  { %v365_v50 = vadd.f32 %v364_v49, %v281_v48 }
 0x28d   :  { %v609_v51 = vpop.f32.mrf.mxu0 }
 0x28e   :  { %v370_v52 = vpack.c.bf16 %v365_v50, %v365_v50 }
 0x28f   :  { %v367_v53 = vpop.f32.mrf.mxu0 }
 0x290   :  { %628 = vmatmul.mubr.bf16.vlgmr.msra.gmra.mxu1 %v370_v52 }
 0x291   :  { %v610_v54 = vpop.f32.mrf.mxu0 }
 0x350   :  { %v473_v57 = vpop.f32.mrf.mxu1 }
 0x351   :  { %v474_v59 = vadd.f32 %v473_v57, %v390_v56 }
 0x352   :  { %v629_v60 = vpop.f32.mrf.mxu1 }
 0x353   :  { %v486_v61 = vmul.f32 %v535_v58, %v474_v59 }
 0x354   :  { %v476_v62 = vpop.f32.mrf.mxu1 }
 0x355   :  { %487 = vadd.xlane.f32.xlu0 %v486_v61 }
 0x356   :  { %v630_v63 = vpop.f32.mrf.mxu1 }
 0x3de   :  { %v488_v2 = vpop.xlane.xlu0 %487 }
 0x3df   :  { %v493_v3 = vadd.f32 %v492_v1, %v488_v2 }
 0x3e1   :  { %v494_v4 = vsub.f32 0.0, %v493_v3 }
 0x3e3   :  { %v495_v5 = vmul.f32 1.442695, %v494_v4 }
 0x3e5   :  { %665 = vpow2.f32 %v495_v5 }
 0x3f2   :  { %v666_v6 = vpop.eup %665 }
 0x3f3   :  { %v497_v7 = vadd.f32 1.0, %v666_v6 }
 0x3f5   :  { %667 = vrcp.f32 %v497_v7 }
 0x402   :  { %v668_v8 = vpop.eup %667 }
 0x403   :  { %501 = vst.msk [vmem:[%s914_s7] sm:$0xff] %vm500_vm2, %v668_v8 }
 0x404   :  { %506 = vsyncpa [#allocation3], 1 }
 0x405   :  { %507 = vsyncpa [#allocation5], 1 }
 0x406   :  { %508 = vsyncpa [#allocation8], 1 }

</bundles_post_ra>
